<compile_context>
chip_gen: v7x
topology: tpu7x:2x2x1
jax: 0.10.0
libtpu: 0.0.40
codegen_flags: <defaults>
</compile_context>

<pallas_src>
import functools
import math

import jax
import jax.numpy as jnp
from jax.experimental import pallas as pl
from jax.experimental.pallas import tpu as pltpu


def make_pos_embedding(emb_size: int, maxlen: int = 5000) -> jnp.ndarray:
    """Deterministic sin/cos positional table, shape (maxlen, 1, emb_size)."""
    den = jnp.exp(-jnp.arange(0, emb_size, 2, dtype=jnp.float32)
                  * (math.log(10000.0) / emb_size))
    pos = jnp.arange(0, maxlen, dtype=jnp.float32).reshape(maxlen, 1)
    args = pos * den                                   # (maxlen, emb_size // 2)
    pe = jnp.zeros((maxlen, emb_size), dtype=jnp.float32)
    pe = pe.at[:, 0::2].set(jnp.sin(args))
    pe = pe.at[:, 1::2].set(jnp.cos(args))
    return pe[:, None, :]                              # (maxlen, 1, emb_size)


def _add_pe_kernel(x_ref, pe_ref, o_ref, *, batch: int):
    # x_ref/o_ref: (ts, B*E) lane-dense tiles; pe_ref: (ts, E).
    pe = pe_ref[...]
    if batch > 1:
        # Replicate the positional rows across the batch copies that live
        # side-by-side on the lane axis: result[r, b*E + e] = pe[r, e].
        pe = jnp.tile(pe, (1, batch))                  # (ts, B*E)
    o_ref[...] = (x_ref[...] + pe).astype(o_ref.dtype)


def _choose_seq_tile(seq_len: int, batch: int, emb: int, itemsize: int) -> int:
    """Byte-budgeted sequence tile (row count) for the streaming add."""
    if seq_len <= 8:
        return seq_len                       # full-extent block, no (8,128) issue
    row_bytes = max(1, batch * emb * itemsize)
    target_tile_bytes = 4 * 1024 * 1024      # ~4 MiB activation tile
    ts = min(seq_len, max(8, (target_tile_bytes // row_bytes) // 8 * 8))
    # Prefer >= 4 grid steps (megacore sharding on v7x, pipelining everywhere)
    # as long as the split tiles stay >= ~1 MiB so the ~0.35us per-step
    # pipeline overhead stays amortized.
    while (pl.cdiv(seq_len, ts) < 4 and ts > 8
           and (ts // 2) * row_bytes >= (1 << 20)):
        ts = max(8, (ts // 2) // 8 * 8)
    return ts


def sequence_positional_encoding(token_embedding: jnp.ndarray,
                                 pos_embedding: jnp.ndarray) -> jnp.ndarray:
    """token_embedding: (S, B, E); pos_embedding: (maxlen, 1, E), maxlen >= S."""
    S, B, E = token_embedding.shape
    maxlen = pos_embedding.shape[0]
    if S > maxlen:
        raise ValueError(
            f"sequence length {S} exceeds positional table maxlen {maxlen}")

    dtype = token_embedding.dtype
    itemsize = jnp.dtype(dtype).itemsize

    # Lane-dense 2-D views: activation (S, B*E) is a free contiguous reshape;
    # the positional table becomes a small (S, E) slab cast to the activation
    # dtype (avoids doubling pe DMA bytes / f32 promotion for bf16 inputs).
    x2d = token_embedding.reshape(S, B * E)
    pe2d = pos_embedding[:S, 0, :].astype(dtype)

    ts = _choose_seq_tile(S, B, E, itemsize)
    grid = (pl.cdiv(S, ts),)   # partial tail block is masked by Pallas

    out2d = pl.pallas_call(
        functools.partial(_add_pe_kernel, batch=B),
        out_shape=jax.ShapeDtypeStruct((S, B * E), dtype),
        grid_spec=pltpu.PrefetchScalarGridSpec(
            num_scalar_prefetch=0,
            grid=grid,
            in_specs=[
                pl.BlockSpec((ts, B * E), lambda i: (i, 0)),
                pl.BlockSpec((ts, E), lambda i: (i, 0)),
            ],
            out_specs=pl.BlockSpec((ts, B * E), lambda i: (i, 0)),
        ),
        compiler_params=pltpu.CompilerParams(
            dimension_semantics=("parallel",),
            # Above the 16 MiB v5e scoped default, under v7x's 64 MiB physical
            # VMEM; actual double-buffered footprint is ~17 MiB at most.
            vmem_limit_bytes=48 * 1024 * 1024,
        ),
        # Pure streaming add: alias the activation buffer to the output.
        input_output_aliases={0: 0},
    )(x2d, pe2d)

    return out2d.reshape(S, B, E)


if __name__ == "__main__":
    # Small shapes: seq=8, batch=2, emb=32, maxlen=64.
    S, B, E, MAXLEN = 8, 2, 32, 64

    key = jax.random.PRNGKey(0)
    token_embedding = jax.random.normal(key, (S, B, E), dtype=jnp.float32)
    pos_embedding = make_pos_embedding(E, MAXLEN)

    out = sequence_positional_encoding(token_embedding, pos_embedding)
    out = jax.block_until_ready(out)

    # Reference check (pure JAX): x + pos_embedding[:S] (dropout = identity in eval).
    ref = token_embedding + pos_embedding[:S]
    assert out.shape == (S, B, E)
    assert jnp.allclose(out, ref, atol=1e-6, rtol=1e-6)

    print("KERNEL_OK")
</pallas_src>

<mosaic_0001>
module attributes {stable_mosaic.version = 11 : i64} {
  func.func @_add_pe_kernel(%arg0: i32, %arg1: memref<8x64xf32, #tpu.memory_space<vmem>>, %arg2: memref<8x32xf32, #tpu.memory_space<vmem>>, %arg3: memref<8x64xf32, #tpu.memory_space<vmem>>) attributes {dimension_semantics = [#tpu.dimension_semantics<parallel>], iteration_bounds = array<i64: 1>, scalar_prefetch = 0 : i64, scratch_operands = 0 : i64, tpu.core_type = #tpu.core_type<tc>, window_params = [{transform_indices = @transform_0, window_bounds = array<i64: 8, 64>}, {transform_indices = @transform_1, window_bounds = array<i64: 8, 32>}, {transform_indices = @transform_2, window_bounds = array<i64: 8, 64>}]} {
    %c0 = arith.constant 0 : index
    %c0_0 = arith.constant 0 : index
    %0 = vector.load %arg2[%c0, %c0_0] : memref<8x32xf32, #tpu.memory_space<vmem>>, vector<8x32xf32>
    %1 = tpu.concatenate %0, %0 in 1 : vector<8x32xf32>, vector<8x32xf32> -> vector<8x64xf32>
    %c0_1 = arith.constant 0 : index
    %c0_2 = arith.constant 0 : index
    %2 = vector.load %arg1[%c0_1, %c0_2] : memref<8x64xf32, #tpu.memory_space<vmem>>, vector<8x64xf32>
    %3 = arith.addf %2, %1 : vector<8x64xf32>
    %c0_3 = arith.constant 0 : index
    %c0_4 = arith.constant 0 : index
    %4 = vector.load %arg3[%c0_3, %c0_4] : memref<8x64xf32, #tpu.memory_space<vmem>>, vector<8x64xf32>
    tpu.vector_store %arg3[%c0_3, %c0_4], %3 {strides = array<i32>} : memref<8x64xf32, #tpu.memory_space<vmem>>, vector<8x64xf32>,
    return
  }
  func.func @transform_0(%arg0: i32) -> (i32, i32) {
    %c0_i32 = arith.constant 0 : i32
    %c0_i32_0 = arith.constant 0 : i32
    return %arg0, %c0_i32 : i32, i32
  }
  func.func @transform_1(%arg0: i32) -> (i32, i32) {
    %c0_i32 = arith.constant 0 : i32
    %c0_i32_0 = arith.constant 0 : i32
    return %arg0, %c0_i32 : i32, i32
  }
  func.func @transform_2(%arg0: i32) -> (i32, i32) {
    %c0_i32 = arith.constant 0 : i32
    %c0_i32_0 = arith.constant 0 : i32
    return %arg0, %c0_i32 : i32, i32
  }
}

</mosaic_0001>

<bundles_post_ra>
// kernel: tpu_custom_call.1
= control target key start
LH: loop header
LB: loop body
LE: loop exit
PB: predicated region body
PF: predicated region fallthrough
CT: control target
= control target key end

     0   :  { %7 = vsyncpa [#allocation3], 0  ;;  %s146_s0 = inlined_call_operand.hbm [shape: f32[8,64], index: 0, kind: input, shape index: {}, may-alias: {0,2}]   ;;  %s147_s1 = inlined_call_operand.vmem [shape: f32[8,32], index: 1, kind: input, shape index: {}]   ;;  %s148_s2 = inlined_call_operand.hbm [shape: f32[8,64], index: 2, kind: output, shape index: {}, may-alias: {0,2}]  }
   0x1   :  { %8 = vsyncpa [#allocation4], 0  ;;  %s101_s9 = smov [#allocation2]   ;;  %s53_s13 = scalar_lea.hbm %s146_s0, 128 }
   0x2   :  { %s15_s10 = sshll.u32 %s101_s9, 4  ;;  %p54_p0 = scmp.ne.s32.totalorder %s146_s0, %s53_s13  ;;  %s16_s10 = int_to_ptr.vmem [resolvable:$true] %s15_s10 }
   0x3   :  { %p57_p1 = scmp.lt.u32.totalorder %s53_s13, %s146_s0 }
   0x5   :  { %p59_p2 = pnand %p57_p1, %p54_p0 }
   0x7   :  { %62 = shalt.err (!%p59_p2)
}
   0x8   :  { %s63_s18 = scalar_lea.vmem %s16_s10, 128  ;;  %p68_p4 = scmp.lt.s32.totalorder %s16_s10, %s16_s10 }
   0x9   :  { %p64_p3 = scmp.ne.s32.totalorder %s16_s10, %s63_s18  ;;  %p69_p5 = scmp.lt.s32.totalorder %s63_s18, %s63_s18 }
   0xb   :  { %p70_p6 = por %p69_p5, %p68_p4 }
   0xd   :  { %p71_p7 = pnand %p70_p6, %p64_p3 }
   0xf   :  { %74 = shalt.err (!%p71_p7)
}
  0x10   :  { %18 = dma.hbm_to_vmem [thread:$0]  %s146_s0, 128, %s16_s10, [#allocation3]  }
  0x11   :  { %97 = dma.done.wait [#allocation3], 128  }
  0x12   :  { %98 = vsyncadd [#allocation3], 4294967168  ;;  %v24_v0 = vld [vmem:[%s147_s1] sm:$0xff]  ;;  %s102_s23 = smov 32   ;;  %vm29_vm0 = vcmask 261120   ;;  %s103_s24 = smov [#allocation5]  }
  0x13   :  { %26 = vrot.lane.b32.xlu0 %v24_v0, %s102_s23  ;;  %v31_v1 = vld [vmem:[#allocation2] sm:$0xff]  ;;  %s41_s25 = sshll.u32 %s103_s24, 4  ;;  %vm33_vm1 = vcmask 523264   ;;  %s42_s25 = int_to_ptr.vmem [resolvable:$true] %s41_s25 }
  0x14   :  { %s75_s26 = scalar_lea.vmem %s42_s25, 128  ;;  %p80_p9 = scmp.lt.s32.totalorder %s42_s25, %s42_s25 }
  0x15   :  { %p76_p8 = scmp.ne.s32.totalorder %s42_s25, %s75_s26  ;;  %p81_p10 = scmp.lt.s32.totalorder %s75_s26, %s75_s26 }
  0x17   :  { %p82_p11 = por %p81_p10, %p80_p9 }
  0x19   :  { %p83_p12 = pnand %p82_p11, %p76_p8 }
  0x85   :  { %v27_v2 = vpop.permute.xlu0 %26 }
  0x86   :  { %v30_v3 = vsel %vm29_vm0, %v24_v0, %v27_v2 }
  0x87   :  { %v32_v4 = vadd.f32 %v31_v1, %v30_v3 }
  0x89   :  { %34 = vst.msk [vmem:[#allocation5] sm:$0xff] %vm33_vm1, %v32_v4 }
  0x8a   :  { %86 = shalt.err (!%p83_p12)
}
  0x8b   :  { %s87_s27 = scalar_lea.hbm %s148_s2, 128 }
  0x8c   :  { %p88_p13 = scmp.ne.s32.totalorder %s148_s2, %s87_s27  ;;  %p91_p0 = scmp.lt.u32.totalorder %s87_s27, %s148_s2 }
  0x8e   :  { %p93_p1 = pnand %p91_p0, %p88_p13 }
  0x90   :  { %96 = shalt.err (!%p93_p1)
}
  0x91   :  { %44 = dma.vmem_to_hbm [thread:$0]  %s42_s25, 128, %s148_s2, [#allocation4]  }
  0x92   :  { %99 = dma.done.wait [#allocation4], 128  }
  0x93   :  { %100 = vsyncadd [#allocation4], 4294967168 }
  0x94   :  { %48 = vsyncpa [#allocation3], 1 }
  0x95   :  { %49 = vsyncpa [#allocation4], 1 }

</bundles_post_ra>
